<compile_context>
chip_gen: v7x
topology: tpu7x:2x2x1
jax: 0.10.0
libtpu: 0.0.40
codegen_flags: <defaults>
</compile_context>

<pallas_src>
import jax
import jax.numpy as jnp
from jax import lax
from jax.experimental import pallas as pl
from jax.experimental.pallas import tpu as pltpu
import numpy as np

# ---------------- model sizes (small, consistent with the module) ----------------
VOCAB = 16          # embedding table rows
EMB = 32            # embedding_size (LSTM input size)
HID = 32            # hidden_size
SEQ = 8             # number of tokens fed to forward()


# ---------------- Pallas kernel: fused one-hot embedding + packed-gate LSTM ----------------
def encoder_lstm_kernel(tok_ref, tbl_ref, wih_ref, whh_ref, b_ref, h0_ref, c0_ref,
                        out_ref, cN_ref):
    T, H = out_ref.shape
    V = tbl_ref.shape[0]

    # 1) Embedding gather as a one-hot matmul: no scalar loop, no scratch, no dynamic rows.
    tok = tok_ref[...]                                              # (T, 1) int32
    onehot = (lax.broadcasted_iota(jnp.int32, (T, V), 1) == tok).astype(jnp.float32)
    emb = jnp.dot(onehot, tbl_ref[...],
                  preferred_element_type=jnp.float32)               # (T, E)

    # 2) Packed weights / bias (gate order i, f, g, o along the 4H axis).
    wih = wih_ref[...]                                              # (E, 4H)
    whh = whh_ref[...]                                              # (H, 4H)
    b = b_ref[...]                                                  # (1, 4H)

    # 3) Input projection for every timestep in ONE lane-dense MXU matmul
    #    (independent of the recurrence -> off the serial critical path).
    xw = jnp.dot(emb, wih, preferred_element_type=jnp.float32) + b  # (T, 4H)

    # 4) Fully unrolled recurrence: one packed matmul + two full-vreg transcendentals/step,
    #    static slices everywhere, h/c live in vregs across steps.
    h = h0_ref[...]                                                 # (1, H)
    c = c0_ref[...]                                                 # (1, H)
    hs = []
    for t in range(T):
        pre = xw[t:t + 1, :] + jnp.dot(h, whh,
                                       preferred_element_type=jnp.float32)  # (1, 4H)
        sg = jax.nn.sigmoid(pre)       # one EUP pass over the whole packed vreg
        th = jnp.tanh(pre)             # one EUP pass over the whole packed vreg
        i = sg[:, 0 * H:1 * H]
        f = sg[:, 1 * H:2 * H]
        g = th[:, 2 * H:3 * H]
        o = sg[:, 3 * H:4 * H]
        c = f * c + i * g
        h = o * jnp.tanh(c)
        hs.append(h)

    out_ref[...] = jnp.concatenate(hs, axis=0)                      # single bulk (T, H) store
    cN_ref[...] = c                                                 # final cell state


def lstm_pallas(tokens, tbl, wih_t, whh_t, bias, h0, c0):
    T = tokens.shape[0]
    H = h0.shape[1]
    vmem = pl.BlockSpec(memory_space=pltpu.MemorySpace.VMEM)
    return pl.pallas_call(
        encoder_lstm_kernel,
        out_shape=(
            jax.ShapeDtypeStruct((T, H), jnp.float32),   # per-step hidden outputs
            jax.ShapeDtypeStruct((1, H), jnp.float32),   # final cell state
        ),
        in_specs=[vmem] * 7,
        out_specs=(vmem, vmem),
    )(tokens.reshape(T, 1).astype(jnp.int32), tbl, wih_t, whh_t, bias, h0, c0)


# ---------------- parameter init (deterministic, matches nn.LSTM shapes) ----------------
def init_params(key):
    k_emb, k1, k2, k3, k4 = jax.random.split(key, 5)
    bound = 1.0 / np.sqrt(HID)
    u = lambda k, shape: jax.random.uniform(k, shape, jnp.float32, -bound, bound)
    return {
        "embedding": jax.random.normal(k_emb, (VOCAB, EMB), jnp.float32),
        "w_ih": u(k1, (4 * HID, EMB)),   # nn.LSTM weight_ih_l0
        "w_hh": u(k2, (4 * HID, HID)),   # nn.LSTM weight_hh_l0
        "b_ih": u(k3, (4 * HID,)),
        "b_hh": u(k4, (4 * HID,)),
    }


def prepare_encoder_params(params):
    """One-time prep: transpose to right-multiply form (gates stay packed along 4H),
    combine the two biases.  PyTorch gate order [i, f, g, o] is preserved column-wise."""
    return {
        "embedding": params["embedding"],                       # (VOCAB, E)
        "wih_t": jnp.transpose(params["w_ih"], (1, 0)),         # (E, 4H)
        "whh_t": jnp.transpose(params["w_hh"], (1, 0)),         # (H, 4H)
        "bias": (params["b_ih"] + params["b_hh"]).reshape(1, 4 * HID),  # (1, 4H)
    }


# ---------------- EncoderRNN.forward ----------------
def encoder_rnn_forward(X, hidden, context, prep):
    tokens = X.astype(jnp.int32)                          # (T,)
    h0 = hidden.reshape(1, HID)
    c0 = context.reshape(1, HID)
    out, cN = lstm_pallas(tokens, prep["embedding"], prep["wih_t"], prep["whh_t"],
                          prep["bias"], h0, c0)
    T = tokens.shape[0]
    hN = out[T - 1:T]                                     # final hidden == last output row
    # match PyTorch shapes: output (T, 1, H), hidden (1, 1, H), context (1, 1, H)
    return out.reshape(T, 1, HID), hN.reshape(1, 1, HID), cN.reshape(1, 1, HID)


# ---------------- pure-JAX reference (same equations) ----------------
def encoder_rnn_reference(X, hidden, context, params):
    emb = params["embedding"][X.astype(jnp.int32)]
    wih_t = params["w_ih"].T
    whh_t = params["w_hh"].T
    bias = params["b_ih"] + params["b_hh"]
    h = hidden.reshape(1, HID)
    c = context.reshape(1, HID)
    outs = []
    for t in range(emb.shape[0]):
        g = emb[t:t + 1] @ wih_t + h @ whh_t + bias
        i = jax.nn.sigmoid(g[:, 0 * HID:1 * HID])
        f = jax.nn.sigmoid(g[:, 1 * HID:2 * HID])
        gg = jnp.tanh(g[:, 2 * HID:3 * HID])
        o = jax.nn.sigmoid(g[:, 3 * HID:4 * HID])
        c = f * c + i * gg
        h = o * jnp.tanh(c)
        outs.append(h)
    return jnp.stack(outs).reshape(-1, 1, HID), h.reshape(1, 1, HID), c.reshape(1, 1, HID)


if __name__ == "__main__":
    key = jax.random.PRNGKey(0)
    params = init_params(key)
    prep = prepare_encoder_params(params)     # transposes / bias combine hoisted out of forward

    # deterministic token ids + initial (hidden, context) = zeros (get_initial_hidden_state)
    X = jax.random.randint(jax.random.PRNGKey(1), (SEQ,), 0, VOCAB)
    hidden = jnp.zeros((1, 1, HID), jnp.float32)
    context = jnp.zeros((1, 1, HID), jnp.float32)

    fwd = jax.jit(encoder_rnn_forward)
    out, hN, cN = fwd(X, hidden, context, prep)
    jax.block_until_ready((out, hN, cN))

    out_r, hN_r, cN_r = encoder_rnn_reference(X, hidden, context, params)
    assert out.shape == (SEQ, 1, HID) and hN.shape == (1, 1, HID) and cN.shape == (1, 1, HID)
    np.testing.assert_allclose(np.asarray(out), np.asarray(out_r), rtol=1e-5, atol=1e-5)
    np.testing.assert_allclose(np.asarray(hN), np.asarray(hN_r), rtol=1e-5, atol=1e-5)
    np.testing.assert_allclose(np.asarray(cN), np.asarray(cN_r), rtol=1e-5, atol=1e-5)

    print("KERNEL_OK")
</pallas_src>

<mosaic_0001>
module attributes {stable_mosaic.version = 11 : i64} {
  func.func @encoder_lstm_kernel(%arg0: memref<8x1xi32, #tpu.memory_space<vmem>>, %arg1: memref<16x32xf32, #tpu.memory_space<vmem>>, %arg2: memref<32x128xf32, #tpu.memory_space<vmem>>, %arg3: memref<32x128xf32, #tpu.memory_space<vmem>>, %arg4: memref<1x128xf32, #tpu.memory_space<vmem>>, %arg5: memref<1x32xf32, #tpu.memory_space<vmem>>, %arg6: memref<1x32xf32, #tpu.memory_space<vmem>>, %arg7: memref<8x32xf32, #tpu.memory_space<vmem>>, %arg8: memref<1x32xf32, #tpu.memory_space<vmem>>) attributes {dimension_semantics = [], scalar_prefetch = 0 : i64, scratch_operands = 0 : i64, tpu.core_type = #tpu.core_type<tc>} {
    %c0 = arith.constant 0 : index
    %c0_0 = arith.constant 0 : index
    %0 = vector.load %arg0[%c0, %c0_0] : memref<8x1xi32, #tpu.memory_space<vmem>>, vector<8x1xi32>
    %1 = tpu.iota {dimensions = array<i32: 1>} : vector<8x16xi32>
    %2 = vector.broadcast %0 : vector<8x1xi32> to vector<8x16xi32>
    %3 = arith.cmpi eq, %1, %2 : vector<8x16xi32>
    %4 = arith.extui %3 : vector<8x16xi1> to vector<8x16xi32>
    %5 = arith.sitofp %4 : vector<8x16xi32> to vector<8x16xf32>
    %c0_1 = arith.constant 0 : index
    %c0_2 = arith.constant 0 : index
    %6 = vector.load %arg1[%c0_1, %c0_2] : memref<16x32xf32, #tpu.memory_space<vmem>>, vector<16x32xf32>
    %cst = arith.constant dense<0.000000e+00> : vector<8x32xf32>
    %7 = tpu.matmul %5, %6, %cst {dimension_numbers = #tpu.dot_dimension_numbers<[1], [0], [0], [1], [0, 0, 1, 1], [], []>} : vector<8x16xf32>, vector<16x32xf32>, vector<8x32xf32> -> vector<8x32xf32>
    %c0_3 = arith.constant 0 : index
    %c0_4 = arith.constant 0 : index
    %8 = vector.load %arg2[%c0_3, %c0_4] : memref<32x128xf32, #tpu.memory_space<vmem>>, vector<32x128xf32>
    %c0_5 = arith.constant 0 : index
    %c0_6 = arith.constant 0 : index
    %9 = vector.load %arg3[%c0_5, %c0_6] : memref<32x128xf32, #tpu.memory_space<vmem>>, vector<32x128xf32>
    %c0_7 = arith.constant 0 : index
    %c0_8 = arith.constant 0 : index
    %10 = vector.load %arg4[%c0_7, %c0_8] : memref<1x128xf32, #tpu.memory_space<vmem>>, vector<1x128xf32>
    %cst_9 = arith.constant dense<0.000000e+00> : vector<8x128xf32>
    %11 = tpu.matmul %7, %8, %cst_9 {dimension_numbers = #tpu.dot_dimension_numbers<[1], [0], [0], [1], [0, 0, 1, 1], [], []>} : vector<8x32xf32>, vector<32x128xf32>, vector<8x128xf32> -> vector<8x128xf32>
    %12 = vector.broadcast %10 : vector<1x128xf32> to vector<8x128xf32>
    %13 = arith.addf %11, %12 : vector<8x128xf32>
    %c0_10 = arith.constant 0 : index
    %c0_11 = arith.constant 0 : index
    %14 = vector.load %arg5[%c0_10, %c0_11] : memref<1x32xf32, #tpu.memory_space<vmem>>, vector<1x32xf32>
    %c0_12 = arith.constant 0 : index
    %c0_13 = arith.constant 0 : index
    %15 = vector.load %arg6[%c0_12, %c0_13] : memref<1x32xf32, #tpu.memory_space<vmem>>, vector<1x32xf32>
    %16 = vector.extract_strided_slice %13 {offsets = [0, 0], sizes = [1, 128], strides = [1, 1]} : vector<8x128xf32> to vector<1x128xf32>
    %cst_14 = arith.constant dense<0.000000e+00> : vector<1x128xf32>
    %17 = tpu.matmul %14, %9, %cst_14 {dimension_numbers = #tpu.dot_dimension_numbers<[1], [0], [0], [1], [0, 0, 1, 1], [], []>} : vector<1x32xf32>, vector<32x128xf32>, vector<1x128xf32> -> vector<1x128xf32>
    %18 = arith.addf %16, %17 : vector<1x128xf32>
    %19 = arith.negf %18 : vector<1x128xf32>
    %20 = math.exp %19 : vector<1x128xf32>
    %cst_15 = arith.constant 1.000000e+00 : f32
    %21 = vector.broadcast %cst_15 : f32 to vector<1x128xf32>
    %22 = arith.addf %21, %20 : vector<1x128xf32>
    %23 = arith.divf %21, %22 : vector<1x128xf32>
    %24 = math.tanh %18 : vector<1x128xf32>
    %25 = vector.extract_strided_slice %23 {offsets = [0, 0], sizes = [1, 32], strides = [1, 1]} : vector<1x128xf32> to vector<1x32xf32>
    %26 = vector.extract_strided_slice %23 {offsets = [0, 32], sizes = [1, 32], strides = [1, 1]} : vector<1x128xf32> to vector<1x32xf32>
    %27 = vector.extract_strided_slice %24 {offsets = [0, 64], sizes = [1, 32], strides = [1, 1]} : vector<1x128xf32> to vector<1x32xf32>
    %28 = vector.extract_strided_slice %23 {offsets = [0, 96], sizes = [1, 32], strides = [1, 1]} : vector<1x128xf32> to vector<1x32xf32>
    %29 = arith.mulf %26, %15 : vector<1x32xf32>
    %30 = arith.mulf %25, %27 : vector<1x32xf32>
    %31 = arith.addf %29, %30 : vector<1x32xf32>
    %32 = math.tanh %31 : vector<1x32xf32>
    %33 = arith.mulf %28, %32 : vector<1x32xf32>
    %34 = vector.extract_strided_slice %13 {offsets = [1, 0], sizes = [1, 128], strides = [1, 1]} : vector<8x128xf32> to vector<1x128xf32>
    %cst_16 = arith.constant dense<0.000000e+00> : vector<1x128xf32>
    %35 = tpu.matmul %33, %9, %cst_16 {dimension_numbers = #tpu.dot_dimension_numbers<[1], [0], [0], [1], [0, 0, 1, 1], [], []>} : vector<1x32xf32>, vector<32x128xf32>, vector<1x128xf32> -> vector<1x128xf32>
    %36 = arith.addf %34, %35 : vector<1x128xf32>
    %37 = arith.negf %36 : vector<1x128xf32>
    %38 = math.exp %37 : vector<1x128xf32>
    %cst_17 = arith.constant 1.000000e+00 : f32
    %39 = vector.broadcast %cst_17 : f32 to vector<1x128xf32>
    %40 = arith.addf %39, %38 : vector<1x128xf32>
    %41 = arith.divf %39, %40 : vector<1x128xf32>
    %42 = math.tanh %36 : vector<1x128xf32>
    %43 = vector.extract_strided_slice %41 {offsets = [0, 0], sizes = [1, 32], strides = [1, 1]} : vector<1x128xf32> to vector<1x32xf32>
    %44 = vector.extract_strided_slice %41 {offsets = [0, 32], sizes = [1, 32], strides = [1, 1]} : vector<1x128xf32> to vector<1x32xf32>
    %45 = vector.extract_strided_slice %42 {offsets = [0, 64], sizes = [1, 32], strides = [1, 1]} : vector<1x128xf32> to vector<1x32xf32>
    %46 = vector.extract_strided_slice %41 {offsets = [0, 96], sizes = [1, 32], strides = [1, 1]} : vector<1x128xf32> to vector<1x32xf32>
    %47 = arith.mulf %44, %31 : vector<1x32xf32>
    %48 = arith.mulf %43, %45 : vector<1x32xf32>
    %49 = arith.addf %47, %48 : vector<1x32xf32>
    %50 = math.tanh %49 : vector<1x32xf32>
    %51 = arith.mulf %46, %50 : vector<1x32xf32>
    %52 = vector.extract_strided_slice %13 {offsets = [2, 0], sizes = [1, 128], strides = [1, 1]} : vector<8x128xf32> to vector<1x128xf32>
    %cst_18 = arith.constant dense<0.000000e+00> : vector<1x128xf32>
    %53 = tpu.matmul %51, %9, %cst_18 {dimension_numbers = #tpu.dot_dimension_numbers<[1], [0], [0], [1], [0, 0, 1, 1], [], []>} : vector<1x32xf32>, vector<32x128xf32>, vector<1x128xf32> -> vector<1x128xf32>
    %54 = arith.addf %52, %53 : vector<1x128xf32>
    %55 = arith.negf %54 : vector<1x128xf32>
    %56 = math.exp %55 : vector<1x128xf32>
    %cst_19 = arith.constant 1.000000e+00 : f32
    %57 = vector.broadcast %cst_19 : f32 to vector<1x128xf32>
    %58 = arith.addf %57, %56 : vector<1x128xf32>
    %59 = arith.divf %57, %58 : vector<1x128xf32>
    %60 = math.tanh %54 : vector<1x128xf32>
    %61 = vector.extract_strided_slice %59 {offsets = [0, 0], sizes = [1, 32], strides = [1, 1]} : vector<1x128xf32> to vector<1x32xf32>
    %62 = vector.extract_strided_slice %59 {offsets = [0, 32], sizes = [1, 32], strides = [1, 1]} : vector<1x128xf32> to vector<1x32xf32>
    %63 = vector.extract_strided_slice %60 {offsets = [0, 64], sizes = [1, 32], strides = [1, 1]} : vector<1x128xf32> to vector<1x32xf32>
    %64 = vector.extract_strided_slice %59 {offsets = [0, 96], sizes = [1, 32], strides = [1, 1]} : vector<1x128xf32> to vector<1x32xf32>
    %65 = arith.mulf %62, %49 : vector<1x32xf32>
    %66 = arith.mulf %61, %63 : vector<1x32xf32>
    %67 = arith.addf %65, %66 : vector<1x32xf32>
    %68 = math.tanh %67 : vector<1x32xf32>
    %69 = arith.mulf %64, %68 : vector<1x32xf32>
    %70 = vector.extract_strided_slice %13 {offsets = [3, 0], sizes = [1, 128], strides = [1, 1]} : vector<8x128xf32> to vector<1x128xf32>
    %cst_20 = arith.constant dense<0.000000e+00> : vector<1x128xf32>
    %71 = tpu.matmul %69, %9, %cst_20 {dimension_numbers = #tpu.dot_dimension_numbers<[1], [0], [0], [1], [0, 0, 1, 1], [], []>} : vector<1x32xf32>, vector<32x128xf32>, vector<1x128xf32> -> vector<1x128xf32>
    %72 = arith.addf %70, %71 : vector<1x128xf32>
    %73 = arith.negf %72 : vector<1x128xf32>
    %74 = math.exp %73 : vector<1x128xf32>
    %cst_21 = arith.constant 1.000000e+00 : f32
    %75 = vector.broadcast %cst_21 : f32 to vector<1x128xf32>
    %76 = arith.addf %75, %74 : vector<1x128xf32>
    %77 = arith.divf %75, %76 : vector<1x128xf32>
    %78 = math.tanh %72 : vector<1x128xf32>
    %79 = vector.extract_strided_slice %77 {offsets = [0, 0], sizes = [1, 32], strides = [1, 1]} : vector<1x128xf32> to vector<1x32xf32>
    %80 = vector.extract_strided_slice %77 {offsets = [0, 32], sizes = [1, 32], strides = [1, 1]} : vector<1x128xf32> to vector<1x32xf32>
    %81 = vector.extract_strided_slice %78 {offsets = [0, 64], sizes = [1, 32], strides = [1, 1]} : vector<1x128xf32> to vector<1x32xf32>
    %82 = vector.extract_strided_slice %77 {offsets = [0, 96], sizes = [1, 32], strides = [1, 1]} : vector<1x128xf32> to vector<1x32xf32>
    %83 = arith.mulf %80, %67 : vector<1x32xf32>
    %84 = arith.mulf %79, %81 : vector<1x32xf32>
    %85 = arith.addf %83, %84 : vector<1x32xf32>
    %86 = math.tanh %85 : vector<1x32xf32>
    %87 = arith.mulf %82, %86 : vector<1x32xf32>
    %88 = vector.extract_strided_slice %13 {offsets = [4, 0], sizes = [1, 128], strides = [1, 1]} : vector<8x128xf32> to vector<1x128xf32>
    %cst_22 = arith.constant dense<0.000000e+00> : vector<1x128xf32>
    %89 = tpu.matmul %87, %9, %cst_22 {dimension_numbers = #tpu.dot_dimension_numbers<[1], [0], [0], [1], [0, 0, 1, 1], [], []>} : vector<1x32xf32>, vector<32x128xf32>, vector<1x128xf32> -> vector<1x128xf32>
    %90 = arith.addf %88, %89 : vector<1x128xf32>
    %91 = arith.negf %90 : vector<1x128xf32>
    %92 = math.exp %91 : vector<1x128xf32>
    %cst_23 = arith.constant 1.000000e+00 : f32
    %93 = vector.broadcast %cst_23 : f32 to vector<1x128xf32>
    %94 = arith.addf %93, %92 : vector<1x128xf32>
    %95 = arith.divf %93, %94 : vector<1x128xf32>
    %96 = math.tanh %90 : vector<1x128xf32>
    %97 = vector.extract_strided_slice %95 {offsets = [0, 0], sizes = [1, 32], strides = [1, 1]} : vector<1x128xf32> to vector<1x32xf32>
    %98 = vector.extract_strided_slice %95 {offsets = [0, 32], sizes = [1, 32], strides = [1, 1]} : vector<1x128xf32> to vector<1x32xf32>
    %99 = vector.extract_strided_slice %96 {offsets = [0, 64], sizes = [1, 32], strides = [1, 1]} : vector<1x128xf32> to vector<1x32xf32>
    %100 = vector.extract_strided_slice %95 {offsets = [0, 96], sizes = [1, 32], strides = [1, 1]} : vector<1x128xf32> to vector<1x32xf32>
    %101 = arith.mulf %98, %85 : vector<1x32xf32>
    %102 = arith.mulf %97, %99 : vector<1x32xf32>
    %103 = arith.addf %101, %102 : vector<1x32xf32>
    %104 = math.tanh %103 : vector<1x32xf32>
    %105 = arith.mulf %100, %104 : vector<1x32xf32>
    %106 = vector.extract_strided_slice %13 {offsets = [5, 0], sizes = [1, 128], strides = [1, 1]} : vector<8x128xf32> to vector<1x128xf32>
    %cst_24 = arith.constant dense<0.000000e+00> : vector<1x128xf32>
    %107 = tpu.matmul %105, %9, %cst_24 {dimension_numbers = #tpu.dot_dimension_numbers<[1], [0], [0], [1], [0, 0, 1, 1], [], []>} : vector<1x32xf32>, vector<32x128xf32>, vector<1x128xf32> -> vector<1x128xf32>
    %108 = arith.addf %106, %107 : vector<1x128xf32>
    %109 = arith.negf %108 : vector<1x128xf32>
    %110 = math.exp %109 : vector<1x128xf32>
    %cst_25 = arith.constant 1.000000e+00 : f32
    %111 = vector.broadcast %cst_25 : f32 to vector<1x128xf32>
    %112 = arith.addf %111, %110 : vector<1x128xf32>
    %113 = arith.divf %111, %112 : vector<1x128xf32>
    %114 = math.tanh %108 : vector<1x128xf32>
    %115 = vector.extract_strided_slice %113 {offsets = [0, 0], sizes = [1, 32], strides = [1, 1]} : vector<1x128xf32> to vector<1x32xf32>
    %116 = vector.extract_strided_slice %113 {offsets = [0, 32], sizes = [1, 32], strides = [1, 1]} : vector<1x128xf32> to vector<1x32xf32>
    %117 = vector.extract_strided_slice %114 {offsets = [0, 64], sizes = [1, 32], strides = [1, 1]} : vector<1x128xf32> to vector<1x32xf32>
    %118 = vector.extract_strided_slice %113 {offsets = [0, 96], sizes = [1, 32], strides = [1, 1]} : vector<1x128xf32> to vector<1x32xf32>
    %119 = arith.mulf %116, %103 : vector<1x32xf32>
    %120 = arith.mulf %115, %117 : vector<1x32xf32>
    %121 = arith.addf %119, %120 : vector<1x32xf32>
    %122 = math.tanh %121 : vector<1x32xf32>
    %123 = arith.mulf %118, %122 : vector<1x32xf32>
    %124 = vector.extract_strided_slice %13 {offsets = [6, 0], sizes = [1, 128], strides = [1, 1]} : vector<8x128xf32> to vector<1x128xf32>
    %cst_26 = arith.constant dense<0.000000e+00> : vector<1x128xf32>
    %125 = tpu.matmul %123, %9, %cst_26 {dimension_numbers = #tpu.dot_dimension_numbers<[1], [0], [0], [1], [0, 0, 1, 1], [], []>} : vector<1x32xf32>, vector<32x128xf32>, vector<1x128xf32> -> vector<1x128xf32>
    %126 = arith.addf %124, %125 : vector<1x128xf32>
    %127 = arith.negf %126 : vector<1x128xf32>
    %128 = math.exp %127 : vector<1x128xf32>
    %cst_27 = arith.constant 1.000000e+00 : f32
    %129 = vector.broadcast %cst_27 : f32 to vector<1x128xf32>
    %130 = arith.addf %129, %128 : vector<1x128xf32>
    %131 = arith.divf %129, %130 : vector<1x128xf32>
    %132 = math.tanh %126 : vector<1x128xf32>
    %133 = vector.extract_strided_slice %131 {offsets = [0, 0], sizes = [1, 32], strides = [1, 1]} : vector<1x128xf32> to vector<1x32xf32>
    %134 = vector.extract_strided_slice %131 {offsets = [0, 32], sizes = [1, 32], strides = [1, 1]} : vector<1x128xf32> to vector<1x32xf32>
    %135 = vector.extract_strided_slice %132 {offsets = [0, 64], sizes = [1, 32], strides = [1, 1]} : vector<1x128xf32> to vector<1x32xf32>
    %136 = vector.extract_strided_slice %131 {offsets = [0, 96], sizes = [1, 32], strides = [1, 1]} : vector<1x128xf32> to vector<1x32xf32>
    %137 = arith.mulf %134, %121 : vector<1x32xf32>
    %138 = arith.mulf %133, %135 : vector<1x32xf32>
    %139 = arith.addf %137, %138 : vector<1x32xf32>
    %140 = math.tanh %139 : vector<1x32xf32>
    %141 = arith.mulf %136, %140 : vector<1x32xf32>
    %142 = vector.extract_strided_slice %13 {offsets = [7, 0], sizes = [1, 128], strides = [1, 1]} : vector<8x128xf32> to vector<1x128xf32>
    %cst_28 = arith.constant dense<0.000000e+00> : vector<1x128xf32>
    %143 = tpu.matmul %141, %9, %cst_28 {dimension_numbers = #tpu.dot_dimension_numbers<[1], [0], [0], [1], [0, 0, 1, 1], [], []>} : vector<1x32xf32>, vector<32x128xf32>, vector<1x128xf32> -> vector<1x128xf32>
    %144 = arith.addf %142, %143 : vector<1x128xf32>
    %145 = arith.negf %144 : vector<1x128xf32>
    %146 = math.exp %145 : vector<1x128xf32>
    %cst_29 = arith.constant 1.000000e+00 : f32
    %147 = vector.broadcast %cst_29 : f32 to vector<1x128xf32>
    %148 = arith.addf %147, %146 : vector<1x128xf32>
    %149 = arith.divf %147, %148 : vector<1x128xf32>
    %150 = math.tanh %144 : vector<1x128xf32>
    %151 = vector.extract_strided_slice %149 {offsets = [0, 0], sizes = [1, 32], strides = [1, 1]} : vector<1x128xf32> to vector<1x32xf32>
    %152 = vector.extract_strided_slice %149 {offsets = [0, 32], sizes = [1, 32], strides = [1, 1]} : vector<1x128xf32> to vector<1x32xf32>
    %153 = vector.extract_strided_slice %150 {offsets = [0, 64], sizes = [1, 32], strides = [1, 1]} : vector<1x128xf32> to vector<1x32xf32>
    %154 = vector.extract_strided_slice %149 {offsets = [0, 96], sizes = [1, 32], strides = [1, 1]} : vector<1x128xf32> to vector<1x32xf32>
    %155 = arith.mulf %152, %139 : vector<1x32xf32>
    %156 = arith.mulf %151, %153 : vector<1x32xf32>
    %157 = arith.addf %155, %156 : vector<1x32xf32>
    %158 = math.tanh %157 : vector<1x32xf32>
    %159 = arith.mulf %154, %158 : vector<1x32xf32>
    %160 = tpu.concatenate %33, %51, %69, %87, %105, %123, %141, %159 in 0 : vector<1x32xf32>, vector<1x32xf32>, vector<1x32xf32>, vector<1x32xf32>, vector<1x32xf32>, vector<1x32xf32>, vector<1x32xf32>, vector<1x32xf32> -> vector<8x32xf32>
    %c0_30 = arith.constant 0 : index
    %c0_31 = arith.constant 0 : index
    %161 = vector.load %arg7[%c0_30, %c0_31] : memref<8x32xf32, #tpu.memory_space<vmem>>, vector<8x32xf32>
    tpu.vector_store %arg7[%c0_30, %c0_31], %160 {strides = array<i32>} : memref<8x32xf32, #tpu.memory_space<vmem>>, vector<8x32xf32>,
    %c0_32 = arith.constant 0 : index
    %c0_33 = arith.constant 0 : index
    %162 = vector.load %arg8[%c0_32, %c0_33] : memref<1x32xf32, #tpu.memory_space<vmem>>, vector<1x32xf32>
    tpu.vector_store %arg8[%c0_32, %c0_33], %157 {strides = array<i32>} : memref<1x32xf32, #tpu.memory_space<vmem>>, vector<1x32xf32>,
    return
  }
}

</mosaic_0001>

<bundles_post_ra>
// kernel: encoder_rnn_forward.1
= control target key start
LH: loop header
LB: loop body
LE: loop exit
PB: predicated region body
PF: predicated region fallthrough
CT: control target
= control target key end

     0   :  { %14 = vsyncpa [#allocation3], 0  ;;  %s1750_s0 = inlined_call_operand.vmem [shape: s32[8,1], index: 0, kind: input, shape index: {}]   ;;  %s1751_s1 = inlined_call_operand.hbm [shape: f32[16,32], index: 1, kind: input, shape index: {}]   ;;  %s1752_s2 = inlined_call_operand.vmem [shape: f32[32,128], index: 2, kind: input, shape index: {}]   ;;  %s1753_s3 = inlined_call_operand.hbm [shape: f32[32,128], index: 3, kind: input, shape index: {}]   ;;  %s1754_s4 = inlined_call_operand.vmem [shape: f32[1,128], index: 4, kind: input, shape index: {}]   ;;  %s1755_s5 = inlined_call_operand.vmem [shape: f32[1,32], index: 5, kind: input, shape index: {}]   ;;  %s1756_s6 = inlined_call_operand.vmem [shape: f32[1,32], index: 6, kind: input, shape index: {}]   ;;  %s1757_s7 = inlined_call_operand.vmem [shape: f32[8,32], index: 7, kind: output, shape index: {0}]   ;;  %s1758_s8 = inlined_call_operand.hbm [shape: f32[1,32], index: 8, kind: output, shape index: {1}]  }
   0x1   :  { %15 = vsyncpa [#allocation6], 0 }
   0x2   :  { %16 = vsyncpa [#allocation4], 0  ;;  %s1513_s27 = smov [#allocation2]   ;;  %s1441_s9 = scalar_lea.hbm %s1751_s1, 256 }
   0x3   :  { %s24_s28 = sshll.u32 %s1513_s27, 4  ;;  %p1442_p0 = scmp.ne.s32.totalorder %s1751_s1, %s1441_s9  ;;  %s25_s28 = int_to_ptr.vmem [resolvable:$true] %s24_s28 }
   0x4   :  { %p1445_p1 = scmp.lt.u32.totalorder %s1441_s9, %s1751_s1 }
   0x6   :  { %p1447_p2 = pnand %p1445_p1, %p1442_p0 }
   0x8   :  { %1450 = shalt.err (!%p1447_p2)
}
   0x9   :  { %s1451_s14 = scalar_lea.vmem %s25_s28, 256  ;;  %p1456_p4 = scmp.lt.s32.totalorder %s25_s28, %s25_s28 }
   0xa   :  { %p1452_p3 = scmp.ne.s32.totalorder %s25_s28, %s1451_s14  ;;  %p1457_p5 = scmp.lt.s32.totalorder %s1451_s14, %s1451_s14 }
   0xc   :  { %p1458_p6 = por %p1457_p5, %p1456_p4 }
   0xe   :  { %p1459_p7 = pnand %p1458_p6, %p1452_p3 }
  0x10   :  { %1462 = shalt.err (!%p1459_p7)
}
  0x11   :  { %s1514_s15 = smov 128   ;;  %s1515_s16 = smov 8  }
  0x12   :  { %30 = dma.hbm_to_vmem [thread:$0]  %s1751_s1, 256, %s25_s28, [#allocation3], %s1514_s15, %s1514_s15, %s1515_s16  }
  0x13   :  { %s1516_s19 = smov [#allocation5]   ;;  %s1463_s23 = scalar_lea.hbm %s1753_s3, 512 }
  0x14   :  { %s38_s20 = sshll.u32 %s1516_s19, 4  ;;  %p1464_p8 = scmp.ne.s32.totalorder %s1753_s3, %s1463_s23  ;;  %s39_s20 = int_to_ptr.vmem [resolvable:$true] %s38_s20 }
  0x15   :  { %p1467_p9 = scmp.lt.u32.totalorder %s1463_s23, %s1753_s3 }
  0x17   :  { %p1469_p10 = pnand %p1467_p9, %p1464_p8 }
  0x19   :  { %1472 = shalt.err (!%p1469_p10)
}
  0x1a   :  { %s1473_s29 = scalar_lea.vmem %s39_s20, 512  ;;  %p1478_p12 = scmp.lt.s32.totalorder %s39_s20, %s39_s20 }
  0x1b   :  { %p1474_p11 = scmp.ne.s32.totalorder %s39_s20, %s1473_s29  ;;  %p1479_p13 = scmp.lt.s32.totalorder %s1473_s29, %s1473_s29 }
  0x1d   :  { %p1480_p0 = por %p1479_p13, %p1478_p12 }
  0x1f   :  { %p1481_p1 = pnand %p1480_p0, %p1474_p11 }
  0x21   :  { %1484 = shalt.err (!%p1481_p1)
}
  0x22   :  { %44 = dma.hbm_to_vmem [thread:$0]  %s1753_s3, 512, %s39_s20, [#allocation6], %s1514_s15, %s1514_s15, %s1515_s16  }
  0x23   :  { %1507 = dma.done.wait [#allocation3], 256  }
  0x24   :  { %1508 = vsyncadd [#allocation3], 4294967040 }
  0x25   :  { %1509 = dma.done.wait [#allocation6], 512  }
  0x26   :  { %1510 = vsyncadd [#allocation6], 4294966784  ;;  %v1517_v0 = vmov 0   ;;  %v1518_v1 = vmov 0.0|0.0   ;;  %v57_v2 = vld [vmem:[%s1750_s0] sm:$0xff]  ;;  %v67_v4 = vld [vmem:[#allocation2 + $0x8] sm:$0xff]  ;;  %v58_v13 = vlaneseq }
  0x27   :  { %1376 = vset.pattern.permute.xlu0 %v1517_v0  ;;  %1307 = vmatprep.subr.bf16.mxu0 %v1518_v1  ;;  %v66_v3 = vld [vmem:[#allocation2] sm:$0xff]  ;;  %vm1519_vm0 = vmmov 0   ;;  %v1520_v6 = vmov 0.0   ;;  %v143_v8 = vld [vmem:[%s1752_s2 + $0x8] sm:$0xff]  ;;  %v144_v10 = vld [vmem:[%s1752_s2 + $0x10] sm:$0xff]  ;;  %vm68_vm1 = vcmask 130048  }
  0x28   :  { %1310 = vmatprep.subr.bf16.mxu1 %v1518_v1  ;;  %61 = vperm.xlu0 %1376, %v57_v2   ;;  %v1308_v5 = vpack.c.bf16 %v67_v4, %v66_v3  ;;  %v142_v7 = vld [vmem:[%s1752_s2] sm:$0xff]  ;;  %v145_v11 = vld [vmem:[%s1752_s2 + $0x18] sm:$0xff]  ;;  %v59_v14 = vand.u32 127, %v58_v13  ;;  %v146_v15 = vld [vmem:[#allocation5] sm:$0xff]  ;;  %vm157_vm3 = vcmask 261120   ;;  %s1521_s19 = smov 32  }
  0x29   :  { %1205 = vmatprep.mubr.msk.f32.mxu0 %vm1519_vm0, %v1520_v6  ;;  %1216 = vmatprep.mubr.msk.f32.mxu1 %vm1519_vm0, %v1520_v6  ;;  %v1311_v9 = vpack.c.bf16 %v143_v8, %v142_v7  ;;  %v1314_v12 = vpack.c.bf16 %v145_v11, %v144_v10  ;;  %v147_v16 = vld [vmem:[#allocation5 + $0x8] sm:$0xff]  ;;  %v148_v19 = vld [vmem:[#allocation5 + $0x10] sm:$0xff]  ;;  %v149_v20 = vld [vmem:[#allocation5 + $0x18] sm:$0xff]  ;;  %s1522_s20 = smov 64   ;;  %vm1087_vm4 = vcmask 1040384   ;;  %vm1089_vm5 = vcmask 1041408  }
  0x2a   :  { %1309 = vmatpush3.bf16.msra.mxu0 %v1308_v5  ;;  %v1618_v18 = vpack.c.bf16 %v147_v16, %v146_v15  ;;  %v1622_v22 = vpack.c.bf16 %v149_v20, %v148_v19  ;;  %v231_v23 = vld [vmem:[%s1755_s5] sm:$0x1]  ;;  %vm1091_vm6 = vcmask 1042432   ;;  %vm1093_vm7 = vcmask 1043456   ;;  %s1524_s21 = smov [#allocation7]  }
  0x2b   :  { %1316 = vmatprep.subr.bf16.mxu0 %v1518_v1  ;;  %1312 = vmatpush3.bf16.msra.mxu1 %v1311_v9  ;;  %v1138_v24 = vld [vmem:[%s1756_s6] ss:$0 sm:$0xff]  ;;  %vm1095_vm8 = vcmask 1044480   ;;  %vm1097_vm9 = vcmask 1045504   ;;  %vm1110_vm10 = vcmask 261127   ;;  %s1120_s22 = sshll.u32 %s1524_s21, 4  ;;  %s1121_s22 = int_to_ptr.vmem [resolvable:$true] %s1120_s22 }
  0x2c   :  { %1313 = vmatprep.subr.bf16.mxu1 %v1518_v1  ;;  %319 = vrot.lane.b32.xlu1 %v1138_v24, %s1521_s19  ;;  %v1134_v29 = vld [vmem:[%s1754_s4] ss:$0 sm:$0xff]  ;;  %s1523_s4 = smov 96   ;;  %s1485_s23 = scalar_lea.vmem %s1121_s22, 16 }
  0x2d   :  { %p1486_p2 = scmp.ne.s32.totalorder %s1121_s22, %s1485_s23  ;;  %s1489_s24 = scalar_lea.vmem %s1121_s22, 32 }
  0x2e   :  { %p1490_p3 = scmp.lt.s32.totalorder %s1121_s22, %s1121_s22  ;;  %p1491_p4 = scmp.lt.s32.totalorder %s1489_s24, %s1485_s23 }
  0x2f   :  { %1315 = vmatpush3.bf16.msra.mxu1 %v1314_v12 }
  0x30   :  { %1322 = vmatprep.subr.bf16.mxu1 %v1518_v1  ;;  %p1492_p5 = por %p1491_p4, %p1490_p3 }
  0x32   :  { %p1493_p6 = pnand %p1492_p5, %p1486_p2 }
  0x9e   :  { %v320_v41 = vpop.permute.xlu1 %319 }
  0xa7   :  { %v62_v17 = vpop.permute.xlu0 %61 }
  0xa8   :  { %vm63_vm2 = vcmp.eq.s32.totalorder %v59_v14, %v62_v17 }
  0xa9   :  { %v1132_v21 = vsel %vm63_vm2, 1.0, %v1520_v6 }
  0xaa   :  { %1206 = vmatmul.mubr.msk.f32.vlgmr.msra.gmra.mrb[0].mxu0 %vm68_vm1, %v1132_v21 }
  0xab   :  { %1318 = vmatpush3.bf16.msra.mxu0 %v1618_v18  ;;  %1227 = vmatprep.mubr.msk.f32.mxu0 %vm1519_vm0, %v1520_v6 }
  0xac   :  { %1319 = vmatprep.subr.bf16.mxu0 %v1518_v1 }
  0xaf   :  { %1321 = vmatpush3.bf16.msra.mxu0 %v1622_v22 }
  0xb0   :  { %1328 = vmatprep.subr.bf16.mxu0 %v1518_v1 }
  0xb2   :  { %1228 = vmatmul.mubr.msk.f32.vlgmr.msra.gmra.mrb[2].mxu0 %vm157_vm3, %v231_v23 }
  0xb3   :  { %1330 = vmatpush3.bf16.msra.mxu0 %v1618_v18  ;;  %1249 = vmatprep.mubr.msk.f32.mxu0 %vm1519_vm0, %v1520_v6 }
  0xb4   :  { %1331 = vmatprep.subr.bf16.mxu0 %v1518_v1 }
  0xb7   :  { %1333 = vmatpush3.bf16.msra.mxu0 %v1622_v22 }
  0xb8   :  { %1340 = vmatprep.subr.bf16.mxu0 %v1518_v1 }
 0x17d   :  { %v138_v25 = vpop.f32.mrb[0].mxu0 }
 0x17e   :  { %v1207_v26 = vpop.f32.mrb[1].mxu0  ;;  %1217 = vmatmul.mubr.msk.f32.vlgmr.msra.gmra.mrb[0].mxu1 %vm157_vm3, %v138_v25 }
 0x17f   :  { %1324 = vmatpush3.bf16.msra.mxu1 %v1618_v18  ;;  %1238 = vmatprep.mubr.msk.f32.mxu1 %vm1519_vm0, %v1520_v6 }
 0x180   :  { %1325 = vmatprep.subr.bf16.mxu1 %v1518_v1 }
 0x183   :  { %1327 = vmatpush3.bf16.msra.mxu1 %v1622_v22 }
 0x184   :  { %1334 = vmatprep.subr.bf16.mxu1 %v1518_v1 }
 0x185   :  { %v302_v27 = vpop.f32.mrb[2].mxu0 }
 0x186   :  { %v1229_v28 = vpop.f32.mrb[3].mxu0 }
 0x251   :  { %v227_v30 = vpop.f32.mrb[0].mxu1 }
 0x252   :  { %v1653_v31 = vadd.f32 %v1134_v29, %v227_v30  ;;  %v1218_v32 = vpop.f32.mrb[1].mxu1 }
 0x254   :  { %v306_v33 = vadd.f32 %v302_v27, %v1653_v31 }
 0x256   :  { %1377 = vtanh.f32 %v306_v33  ;;  %v1137_v35 = vmul.f32 -1.442695, %v306_v33 }
 0x258   :  { %1379 = vpow2.f32 %v1137_v35 }
 0x260   :  { %v1378_v34 = vpop.eup %1377 }
 0x261   :  { %324 = vrot.lane.b32.xlu0 %v1378_v34, %s1522_s20 }
 0x262   :  { %v1380_v36 = vpop.eup %1379 }
 0x263   :  { %v310_v37 = vadd.f32 1.0, %v1380_v36 }
 0x265   :  { %1381 = vrcp.f32 %v310_v37 }
 0x26f   :  { %v1382_v38 = vpop.eup %1381 }
 0x270   :  { %v322_v42 = vmul.f32 %v1382_v38, %v320_v41 }
 0x2d3   :  { %v325_v39 = vpop.permute.xlu0 %324 }
 0x2d4   :  { %v327_v40 = vmul.f32 %v1382_v38, %v325_v39 }
 0x2d6   :  { %329 = vrot.lane.b32.xlu1 %v327_v40, %s1521_s19 }
 0x348   :  { %v330_v43 = vpop.permute.xlu1 %329 }
 0x349   :  { %v332_v44 = vadd.f32 %v330_v43, %v322_v42 }
 0x34b   :  { %1383 = vtanh.f32 %v332_v44  ;;  %v426_v60 = vrot.slane %v332_v44, 7 }
 0x355   :  { %v1384_v45 = vpop.eup %1383 }
 0x356   :  { %335 = vrot.lane.b32.xlu0 %v1384_v45, %s1522_s20 }
 0x3c8   :  { %v336_v46 = vpop.permute.xlu0 %335 }
 0x3c9   :  { %v1659_v47 = vmul.f32 %v1382_v38, %v336_v46 }
 0x3cb   :  { %340 = vrot.lane.b32.xlu1 %v1659_v47, %s1521_s19 }
 0x43d   :  { %v341_v48 = vpop.permute.xlu1 %340 }
 0x43e   :  { %1239 = vmatmul.mubr.msk.f32.vlgmr.msra.gmra.mrb[2].mxu1 %vm157_vm3, %v341_v48 }
 0x43f   :  { %1336 = vmatpush3.bf16.msra.mxu1 %v1618_v18  ;;  %1260 = vmatprep.mubr.msk.f32.mxu1 %vm1519_vm0, %v1520_v6 }
 0x440   :  { %1337 = vmatprep.subr.bf16.mxu1 %v1518_v1 }
 0x443   :  { %1339 = vmatpush3.bf16.msra.mxu1 %v1622_v22 }
 0x444   :  { %1346 = vmatprep.subr.bf16.mxu1 %v1518_v1 }
 0x511   :  { %v410_v49 = vpop.f32.mrb[2].mxu1 }
 0x512   :  { %v415_v50 = vrot.slane %v410_v49, 7  ;;  %v1240_v51 = vpop.f32.mrb[3].mxu1 }
 0x514   :  { %v417_v52 = vadd.f32 %v415_v50, %v1653_v31 }
 0x516   :  { %1385 = vtanh.f32 %v417_v52  ;;  %v1140_v54 = vmul.f32 -1.442695, %v417_v52 }
 0x518   :  { %1387 = vpow2.f32 %v1140_v54 }
 0x520   :  { %v1386_v53 = vpop.eup %1385 }
 0x521   :  { %430 = vrot.lane.b32.xlu0 %v1386_v53, %s1522_s20 }
 0x522   :  { %v1388_v55 = vpop.eup %1387 }
 0x523   :  { %v421_v56 = vadd.f32 1.0, %v1388_v55 }
 0x525   :  { %1389 = vrcp.f32 %v421_v56 }
 0x52f   :  { %v1390_v57 = vpop.eup %1389 }
 0x530   :  { %v428_v61 = vmul.f32 %v1390_v57, %v426_v60 }
 0x593   :  { %v431_v58 = vpop.permute.xlu0 %430 }
 0x594   :  { %v433_v59 = vmul.f32 %v1390_v57, %v431_v58 }
 0x596   :  { %435 = vrot.lane.b32.xlu1 %v433_v59, %s1521_s19 }
 0x608   :  { %v436_v62 = vpop.permute.xlu1 %435 }
 0x609   :  { %v438_v63 = vadd.f32 %v436_v62, %v428_v61 }
 0x60b   :  { %1391 = vtanh.f32 %v438_v63  ;;  %v533_v19 = vrot.slane %v438_v63, 7 }
 0x615   :  { %v1392_v0 = vpop.eup %1391 }
 0x616   :  { %441 = vrot.lane.b32.xlu0 %v1392_v0, %s1522_s20 }
 0x688   :  { %v442_v2 = vpop.permute.xlu0 %441 }
 0x689   :  { %v444_v3 = vmul.f32 %v1390_v57, %v442_v2 }
 0x68b   :  { %v446_v4 = vrot.slane %v444_v3, 1  ;;  %v1088_v27 = vsel %vm1087_vm4, %v1659_v47, %v444_v3 }
 0x68d   :  { %447 = vrot.lane.b32.xlu1 %v446_v4, %s1521_s19 }
 0x6ff   :  { %v448_v5 = vpop.permute.xlu1 %447 }
 0x700   :  { %1250 = vmatmul.mubr.msk.f32.vlgmr.msra.gmra.mrb[4].mxu0 %vm157_vm3, %v448_v5 }
 0x701   :  { %1342 = vmatpush3.bf16.msra.mxu0 %v1618_v18  ;;  %1271 = vmatprep.mubr.msk.f32.mxu0 %vm1519_vm0, %v1520_v6 }
 0x702   :  { %1343 = vmatprep.subr.bf16.mxu0 %v1518_v1 }
 0x705   :  { %1345 = vmatpush3.bf16.msra.mxu0 %v1622_v22 }
 0x706   :  { %1352 = vmatprep.subr.bf16.mxu0 %v1518_v1 }
 0x7d3   :  { %v517_v7 = vpop.f32.mrb[4].mxu0 }
 0x7d4   :  { %v522_v8 = vrot.slane %v517_v7, 6  ;;  %v1251_v9 = vpop.f32.mrb[5].mxu0 }
 0x7d6   :  { %v524_v10 = vadd.f32 %v522_v8, %v1653_v31 }
 0x7d8   :  { %1393 = vtanh.f32 %v524_v10  ;;  %v1142_v12 = vmul.f32 -1.442695, %v524_v10 }
 0x7da   :  { %1395 = vpow2.f32 %v1142_v12 }
 0x7e2   :  { %v1394_v11 = vpop.eup %1393 }
 0x7e3   :  { %537 = vrot.lane.b32.xlu0 %v1394_v11, %s1522_s20 }
 0x7e4   :  { %v1396_v13 = vpop.eup %1395 }
 0x7e5   :  { %v528_v14 = vadd.f32 1.0, %v1396_v13 }
 0x7e7   :  { %1397 = vrcp.f32 %v528_v14 }
 0x7f1   :  { %v1398_v15 = vpop.eup %1397 }
 0x7f2   :  { %v535_v20 = vmul.f32 %v1398_v15, %v533_v19 }
 0x855   :  { %v538_v16 = vpop.permute.xlu0 %537 }
 0x856   :  { %v540_v17 = vmul.f32 %v1398_v15, %v538_v16 }
 0x858   :  { %542 = vrot.lane.b32.xlu1 %v540_v17, %s1521_s19 }
 0x8ca   :  { %v543_v21 = vpop.permute.xlu1 %542 }
 0x8cb   :  { %v545_v23 = vadd.f32 %v543_v21, %v535_v20 }
 0x8cd   :  { %1399 = vtanh.f32 %v545_v23  ;;  %v640_v43 = vrot.slane %v545_v23, 7 }
 0x8d7   :  { %v1400_v24 = vpop.eup %1399 }
 0x8d8   :  { %548 = vrot.lane.b32.xlu0 %v1400_v24, %s1522_s20 }
 0x94a   :  { %v549_v25 = vpop.permute.xlu0 %548 }
 0x94b   :  { %v551_v26 = vmul.f32 %v1398_v15, %v549_v25 }
 0x94d   :  { %v553_v28 = vrot.slane %v551_v26, 2  ;;  %v1090_v29 = vsel %vm1089_vm5, %v1088_v27, %v551_v26 }
 0x94f   :  { %554 = vrot.lane.b32.xlu1 %v553_v28, %s1521_s19 }
 0x9c1   :  { %v555_v30 = vpop.permute.xlu1 %554 }
 0x9c2   :  { %1261 = vmatmul.mubr.msk.f32.vlgmr.msra.gmra.mrb[4].mxu1 %vm157_vm3, %v555_v30 }
 0x9c3   :  { %1348 = vmatpush3.bf16.msra.mxu1 %v1618_v18  ;;  %1282 = vmatprep.mubr.msk.f32.mxu1 %vm1519_vm0, %v1520_v6 }
 0x9c4   :  { %1349 = vmatprep.subr.bf16.mxu1 %v1518_v1 }
 0x9c7   :  { %1351 = vmatpush3.bf16.msra.mxu1 %v1622_v22 }
 0x9c8   :  { %1358 = vmatprep.subr.bf16.mxu1 %v1518_v1 }
 0xa95   :  { %v624_v32 = vpop.f32.mrb[4].mxu1 }
 0xa96   :  { %v629_v33 = vrot.slane %v624_v32, 5  ;;  %v1262_v34 = vpop.f32.mrb[5].mxu1 }
 0xa98   :  { %v631_v35 = vadd.f32 %v629_v33, %v1653_v31 }
 0xa9a   :  { %1401 = vtanh.f32 %v631_v35  ;;  %v1144_v37 = vmul.f32 -1.442695, %v631_v35 }
 0xa9c   :  { %1403 = vpow2.f32 %v1144_v37 }
 0xaa4   :  { %v1402_v36 = vpop.eup %1401 }
 0xaa5   :  { %644 = vrot.lane.b32.xlu0 %v1402_v36, %s1522_s20 }
 0xaa6   :  { %v1404_v38 = vpop.eup %1403 }
 0xaa7   :  { %v635_v39 = vadd.f32 1.0, %v1404_v38 }
 0xaa9   :  { %1405 = vrcp.f32 %v635_v39 }
 0xab3   :  { %v1406_v40 = vpop.eup %1405 }
 0xab4   :  { %v642_v44 = vmul.f32 %v1406_v40, %v640_v43 }
 0xb17   :  { %v645_v41 = vpop.permute.xlu0 %644 }
 0xb18   :  { %v647_v42 = vmul.f32 %v1406_v40, %v645_v41 }
 0xb1a   :  { %649 = vrot.lane.b32.xlu1 %v647_v42, %s1521_s19 }
 0xb8c   :  { %v650_v45 = vpop.permute.xlu1 %649 }
 0xb8d   :  { %v652_v46 = vadd.f32 %v650_v45, %v642_v44 }
 0xb8f   :  { %1407 = vtanh.f32 %v652_v46  ;;  %v747_v0 = vrot.slane %v652_v46, 7 }
 0xb99   :  { %v1408_v47 = vpop.eup %1407 }
 0xb9a   :  { %655 = vrot.lane.b32.xlu0 %v1408_v47, %s1522_s20 }
 0xc0c   :  { %v656_v48 = vpop.permute.xlu0 %655 }
 0xc0d   :  { %v658_v49 = vmul.f32 %v1406_v40, %v656_v48 }
 0xc0f   :  { %v660_v50 = vrot.slane %v658_v49, 3  ;;  %v1092_v51 = vsel %vm1091_vm6, %v1090_v29, %v658_v49 }
 0xc11   :  { %661 = vrot.lane.b32.xlu1 %v660_v50, %s1521_s19 }
 0xc83   :  { %v662_v52 = vpop.permute.xlu1 %661 }
 0xc84   :  { %1272 = vmatmul.mubr.msk.f32.vlgmr.msra.gmra.mrb[6].mxu0 %vm157_vm3, %v662_v52 }
 0xc85   :  { %1354 = vmatpush3.bf16.msra.mxu0 %v1618_v18  ;;  %1293 = vmatprep.mubr.msk.f32.mxu0 %vm1519_vm0, %v1520_v6 }
 0xc86   :  { %1355 = vmatprep.subr.bf16.mxu0 %v1518_v1 }
 0xc89   :  { %1357 = vmatpush3.bf16.msra.mxu0 %v1622_v22 }
 0xd57   :  { %v731_v53 = vpop.f32.mrb[6].mxu0 }
 0xd58   :  { %v736_v54 = vrot.slane %v731_v53, 4  ;;  %v1273_v55 = vpop.f32.mrb[7].mxu0 }
 0xd5a   :  { %v738_v56 = vadd.f32 %v736_v54, %v1653_v31 }
 0xd5c   :  { %1409 = vtanh.f32 %v738_v56  ;;  %v1146_v58 = vmul.f32 -1.442695, %v738_v56 }
 0xd5e   :  { %1411 = vpow2.f32 %v1146_v58 }
 0xd66   :  { %v1410_v57 = vpop.eup %1409 }
 0xd67   :  { %751 = vrot.lane.b32.xlu0 %v1410_v57, %s1522_s20 }
 0xd68   :  { %v1412_v59 = vpop.eup %1411 }
 0xd69   :  { %v742_v60 = vadd.f32 1.0, %v1412_v59 }
 0xd6b   :  { %1413 = vrcp.f32 %v742_v60 }
 0xd75   :  { %v1414_v61 = vpop.eup %1413 }
 0xd76   :  { %v749_v2 = vmul.f32 %v1414_v61, %v747_v0 }
 0xdd9   :  { %v752_v62 = vpop.permute.xlu0 %751 }
 0xdda   :  { %v754_v63 = vmul.f32 %v1414_v61, %v752_v62 }
 0xddc   :  { %756 = vrot.lane.b32.xlu1 %v754_v63, %s1521_s19 }
 0xe4e   :  { %v757_v3 = vpop.permute.xlu1 %756 }
 0xe4f   :  { %v759_v4 = vadd.f32 %v757_v3, %v749_v2 }
 0xe51   :  { %1415 = vtanh.f32 %v759_v4 }
 0xe5b   :  { %v1416_v5 = vpop.eup %1415 }
 0xe5c   :  { %762 = vrot.lane.b32.xlu0 %v1416_v5, %s1522_s20 }
 0xece   :  { %v763_v7 = vpop.permute.xlu0 %762 }
 0xecf   :  { %v765_v8 = vmul.f32 %v1414_v61, %v763_v7 }
 0xed1   :  { %v767_v9 = vrot.slane %v765_v8, 4  ;;  %v1094_v10 = vsel %vm1093_vm7, %v1092_v51, %v765_v8 }
 0xed3   :  { %768 = vrot.lane.b32.xlu1 %v767_v9, %s1521_s19 }
 0xf45   :  { %v769_v11 = vpop.permute.xlu1 %768 }
 0xf46   :  { %1283 = vmatmul.mubr.msk.f32.vlgmr.msra.gmra.mrb[6].mxu1 %vm157_vm3, %v769_v11 }
 0xf47   :  { %1360 = vmatpush3.bf16.msra.mxu1 %v1618_v18  ;;  %1304 = vmatprep.mubr.msk.f32.mxu1 %vm1519_vm0, %v1520_v6 }
 0xf48   :  { %1361 = vmatprep.subr.bf16.mxu1 %v1518_v1  ;;  %v854_v1 = vrot.slane %v759_v4, 7 }
 0xf4b   :  { %1363 = vmatpush3.bf16.msra.mxu1 %v1622_v22 }
0x1019   :  { %v838_v12 = vpop.f32.mrb[6].mxu1 }
0x101a   :  { %v843_v13 = vrot.slane %v838_v12, 3  ;;  %v1284_v14 = vpop.f32.mrb[7].mxu1 }
0x101c   :  { %v845_v15 = vadd.f32 %v843_v13, %v1653_v31 }
0x101e   :  { %1417 = vtanh.f32 %v845_v15  ;;  %v1148_v17 = vmul.f32 -1.442695, %v845_v15 }
0x1020   :  { %1419 = vpow2.f32 %v1148_v17 }
0x1028   :  { %v1418_v16 = vpop.eup %1417 }
0x1029   :  { %858 = vrot.lane.b32.xlu0 %v1418_v16, %s1522_s20 }
0x102a   :  { %v1420_v19 = vpop.eup %1419 }
0x102b   :  { %v849_v18 = vadd.f32 1.0, %v1420_v19 }
0x102d   :  { %1421 = vrcp.f32 %v849_v18 }
0x1037   :  { %v1422_v20 = vpop.eup %1421 }
0x1038   :  { %v856_v22 = vmul.f32 %v1422_v20, %v854_v1 }
0x109b   :  { %v859_v6 = vpop.permute.xlu0 %858 }
0x109c   :  { %v861_v21 = vmul.f32 %v1422_v20, %v859_v6 }
0x109e   :  { %863 = vrot.lane.b32.xlu1 %v861_v21, %s1521_s19 }
0x1110   :  { %v864_v23 = vpop.permute.xlu1 %863 }
0x1111   :  { %v866_v24 = vadd.f32 %v864_v23, %v856_v22 }
0x1113   :  { %1423 = vtanh.f32 %v866_v24  ;;  %v961_v43 = vrot.slane %v866_v24, 7 }
0x111d   :  { %v1424_v25 = vpop.eup %1423 }
0x111e   :  { %869 = vrot.lane.b32.xlu0 %v1424_v25, %s1522_s20 }
0x1190   :  { %v870_v26 = vpop.permute.xlu0 %869 }
0x1191   :  { %v872_v27 = vmul.f32 %v1422_v20, %v870_v26 }
0x1193   :  { %v874_v28 = vrot.slane %v872_v27, 5  ;;  %v1096_v29 = vsel %vm1095_vm8, %v1094_v10, %v872_v27 }
0x1195   :  { %875 = vrot.lane.b32.xlu1 %v874_v28, %s1521_s19 }
0x1207   :  { %v876_v30 = vpop.permute.xlu1 %875 }
0x1208   :  { %1294 = vmatmul.mubr.msk.f32.vlgmr.msra.gmra.mrb[8].mxu0 %vm157_vm3, %v876_v30 }
0x12db   :  { %v945_v32 = vpop.f32.mrb[8].mxu0 }
0x12dc   :  { %v950_v33 = vrot.slane %v945_v32, 2  ;;  %v1295_v34 = vpop.f32.mrb[9].mxu0 }
0x12de   :  { %v952_v35 = vadd.f32 %v950_v33, %v1653_v31 }
0x12e0   :  { %1425 = vtanh.f32 %v952_v35  ;;  %v1150_v37 = vmul.f32 -1.442695, %v952_v35 }
0x12e2   :  { %1427 = vpow2.f32 %v1150_v37 }
0x12ea   :  { %v1426_v36 = vpop.eup %1425 }
0x12eb   :  { %965 = vrot.lane.b32.xlu0 %v1426_v36, %s1522_s20 }
0x12ec   :  { %v1428_v38 = vpop.eup %1427 }
0x12ed   :  { %v956_v39 = vadd.f32 1.0, %v1428_v38 }
0x12ef   :  { %1429 = vrcp.f32 %v956_v39 }
0x12f9   :  { %v1430_v40 = vpop.eup %1429 }
0x12fa   :  { %v963_v44 = vmul.f32 %v1430_v40, %v961_v43 }
0x135d   :  { %v966_v41 = vpop.permute.xlu0 %965 }
0x135e   :  { %v968_v42 = vmul.f32 %v1430_v40, %v966_v41 }
0x1360   :  { %970 = vrot.lane.b32.xlu1 %v968_v42, %s1521_s19 }
0x13d2   :  { %v971_v45 = vpop.permute.xlu1 %970 }
0x13d3   :  { %v973_v46 = vadd.f32 %v971_v45, %v963_v44 }
0x13d5   :  { %1431 = vtanh.f32 %v973_v46  ;;  %v1068_v0 = vrot.slane %v973_v46, 7 }
0x13df   :  { %v1432_v47 = vpop.eup %1431 }
0x13e0   :  { %976 = vrot.lane.b32.xlu0 %v1432_v47, %s1522_s20 }
0x1452   :  { %v977_v48 = vpop.permute.xlu0 %976 }
0x1453   :  { %v979_v49 = vmul.f32 %v1430_v40, %v977_v48 }
0x1455   :  { %v981_v50 = vrot.slane %v979_v49, 6  ;;  %v1098_v51 = vsel %vm1097_vm9, %v1096_v29, %v979_v49 }
0x1457   :  { %982 = vrot.lane.b32.xlu1 %v981_v50, %s1521_s19 }
0x14c9   :  { %v983_v52 = vpop.permute.xlu1 %982 }
0x14ca   :  { %1305 = vmatmul.mubr.msk.f32.vlgmr.msra.gmra.mrb[8].mxu1 %vm157_vm3, %v983_v52 }
0x159d   :  { %v1052_v53 = vpop.f32.mrb[8].mxu1 }
0x159e   :  { %v1057_v54 = vrot.slane %v1052_v53, 1  ;;  %v1306_v55 = vpop.f32.mrb[9].mxu1 }
0x15a0   :  { %v1059_v56 = vadd.f32 %v1057_v54, %v1653_v31 }
0x15a2   :  { %1433 = vtanh.f32 %v1059_v56  ;;  %v1152_v58 = vmul.f32 -1.442695, %v1059_v56 }
0x15a4   :  { %1435 = vpow2.f32 %v1152_v58 }
0x15ac   :  { %v1434_v57 = vpop.eup %1433 }
0x15ad   :  { %1072 = vrot.lane.b32.xlu0 %v1434_v57, %s1522_s20 }
0x15ae   :  { %v1436_v59 = vpop.eup %1435 }
0x15af   :  { %v1063_v60 = vadd.f32 1.0, %v1436_v59 }
0x15b1   :  { %1437 = vrcp.f32 %v1063_v60 }
0x15bb   :  { %v1438_v61 = vpop.eup %1437 }
0x15bc   :  { %v1070_v2 = vmul.f32 %v1438_v61, %v1068_v0 }
0x161f   :  { %v1073_v62 = vpop.permute.xlu0 %1072 }
0x1620   :  { %v1075_v63 = vmul.f32 %v1438_v61, %v1073_v62 }
0x1622   :  { %1077 = vrot.lane.b32.xlu1 %v1075_v63, %s1521_s19 }
0x1694   :  { %v1078_v3 = vpop.permute.xlu1 %1077 }
0x1695   :  { %v1080_v4 = vadd.f32 %v1078_v3, %v1070_v2 }
0x1697   :  { %1439 = vtanh.f32 %v1080_v4  ;;  %1107 = vrot.lane.b32.xlu1 %v1080_v4, %s1523_s4 }
0x16a1   :  { %v1440_v31 = vpop.eup %1439 }
0x16a2   :  { %1083 = vrot.lane.b32.xlu0 %v1440_v31, %s1522_s20 }
0x1709   :  { %v1108_v5 = vpop.permute.xlu1 %1107 }
0x170a   :  { %1111 = vst.msk [vmem:[#allocation7 - $0x7] sm:$0x80] %vm1110_vm10, %v1108_v5 }
0x170b   :  { %1496 = shalt.err (!%p1493_p6)
}
0x170c   :  { %s1497_s27 = scalar_lea.hbm %s1758_s8, 16 }
0x170d   :  { %p1498_p7 = scmp.ne.s32.totalorder %s1758_s8, %s1497_s27  ;;  %p1501_p8 = scmp.lt.u32.totalorder %s1497_s27, %s1758_s8 }
0x170f   :  { %p1503_p9 = pnand %p1501_p8, %p1498_p7 }
0x1711   :  { %1506 = shalt.err (!%p1503_p9)
}
0x1712   :  { %1123 = dma.vmem_to_hbm [thread:$0]  %s1121_s22, 16, %s1758_s8, [#allocation4]   ;;  %vm1099_vm11 = vcmask 1046528  }
0x1714   :  { %v1084_v7 = vpop.permute.xlu0 %1083 }
0x1715   :  { %v1086_v8 = vmul.f32 %v1438_v61, %v1084_v7 }
0x1717   :  { %v1100_v9 = vsel %vm1099_vm11, %v1098_v51, %v1086_v8 }
0x1718   :  { %1102 = vrot.lane.b32.xlu0 %v1100_v9, %s1521_s19 }
0x178a   :  { %v1103_v10 = vpop.permute.xlu0 %1102 }
0x178b   :  { %1105 = vst.msk [vmem:[%s1757_s7] sm:$0xff] %vm157_vm3, %v1103_v10 }
0x178c   :  { %1511 = dma.done.wait [#allocation4], 16  }
0x178d   :  { %1512 = vsyncadd [#allocation4], 4294967280 }
0x178e   :  { %1129 = vsyncpa [#allocation3], 1 }
0x178f   :  { %1130 = vsyncpa [#allocation6], 1 }
0x1790   :  { %1131 = vsyncpa [#allocation4], 1 }

</bundles_post_ra>
